<compile_context>
chip_gen: v7x
topology: tpu7x:2x2x1
jax: 0.10.0
libtpu: 0.0.40
codegen_flags: <defaults>
</compile_context>

<pallas_src>
import math

import jax
import jax.numpy as jnp
from jax.experimental import pallas as pl
from jax.experimental.pallas import tpu as pltpu


def _round_up(n, m):
    return ((n + m - 1) // m) * m


def _lane(n):
    return _round_up(n, 128)


def _sub(n):
    return _round_up(n, 8)


def mlp_kernel(x_ref, w1_ref, b1_ref, w2_ref, b2_ref, w3_ref, b3_ref, o_ref):
    # fc_1 + ReLU  (MXU matmul on block-diagonal packed weights, f32 accumulation)
    h1 = jnp.dot(x_ref[...], w1_ref[...], preferred_element_type=jnp.float32)
    h1 = jnp.maximum(h1 + b1_ref[...], 0.0)
    # dropout (eval mode -> identity)
    # fc_2 + ReLU
    h2 = jnp.dot(h1, w2_ref[...], preferred_element_type=jnp.float32)
    h2 = jnp.maximum(h2 + b2_ref[...], 0.0)
    # dropout (eval mode -> identity)
    # fc_3: block-diagonal (P*H2, P) matmul -> lane-major (tile, P) result,
    # no sublane->lane relayout; b3 is a scalar read from SMEM.
    out = jnp.dot(h2, w3_ref[...], preferred_element_type=jnp.float32) + b3_ref[0]
    o_ref[...] = out.astype(o_ref.dtype)


def _block_diag(w, p):
    fi, fo = w.shape
    out = jnp.zeros((p * fi, p * fo), w.dtype)
    for r in range(p):
        out = out.at[r * fi:(r + 1) * fi, r * fo:(r + 1) * fo].set(w)
    return out


def mlp_forward(x, params, *, tb=8192, x_dtype=None):
    """x: [B, D] float32.  Returns [B] (fc_3 output squeezed on dim 1).

    tb:      batch tile in *original* rows (large tiles amortize grid overhead).
    x_dtype: optional jnp.bfloat16 to halve the dominant x HBM stream
             (W1 cast to match; accumulation stays f32 on the MXU).
    """
    w1, b1, w2, b2, w3, b3 = params
    B, D = x.shape
    H1 = w1.shape[1]   # 80
    H2 = w2.shape[1]   # 10

    # Lane packing factor: P original rows share one packed 128-lane row.
    P = max(1, min(8, 128 // D)) if D <= 128 else 1

    x_bytes = 2 if x_dtype == jnp.bfloat16 else 4

    # Packed-row tile: multiple of 8 sublanes, no larger than the batch needs,
    # shrunk until the VMEM working set stays well inside v7x's 64 MiB.
    bp = -(-B // P)                                   # packed rows needed
    tb_p = max(8, min(tb // P, _sub(bp)))
    tb_p = (tb_p // 8) * 8

    def vmem_estimate(t):
        xbuf = 2 * t * _lane(P * D) * x_bytes                  # double-buffered x
        wbuf = 2 * 4 * (_sub(P * D) * _lane(P * H1)
                        + _sub(P * H1) * _lane(P * H2)
                        + _sub(P * H2) * _lane(P))             # resident weights
        bbuf = 2 * 4 * (_lane(P * H1) + _lane(P * H2))
        inter = t * 4 * (_lane(P * H1) + _lane(P * H2))        # h1 / h2
        obuf = 2 * t * _lane(P) * 4                            # double-buffered out
        return xbuf + wbuf + bbuf + inter + obuf

    while vmem_estimate(tb_p) > 24 * 1024 * 1024 and tb_p > 8:
        tb_p = max(8, (tb_p // 2 // 8) * 8)
    vmem_limit = int(min(max(32 * 1024 * 1024, 2 * vmem_estimate(tb_p)),
                         48 * 1024 * 1024))

    # Pad B so the grid tiles evenly (never collapse to one full-batch tile);
    # padded rows are zeros and are sliced off the output.
    steps = -(-bp // tb_p)
    b_pad = steps * tb_p * P
    if b_pad != B:
        x = jnp.pad(x, ((0, b_pad - B), (0, 0)))
    x_packed = x.reshape(b_pad // P, P * D)

    # Block-diagonal packed weights / tiled biases (constants under jit).
    w1_bd = _block_diag(w1, P)                    # (P*D,  P*H1)
    w2_bd = _block_diag(w2, P)                    # (P*H1, P*H2)
    w3_bd = _block_diag(w3, P)                    # (P*H2, P)
    b1_t = jnp.tile(b1.reshape(1, H1), (1, P))    # (1, P*H1)
    b2_t = jnp.tile(b2.reshape(1, H2), (1, P))    # (1, P*H2)
    b3_vec = b3.reshape(1)                        # scalar bias -> SMEM

    if x_dtype is not None:
        x_packed = x_packed.astype(x_dtype)
        w1_bd = w1_bd.astype(x_dtype)

    flops = 2 * b_pad * (D * H1 + H1 * H2 + H2)
    bytes_accessed = int(x_bytes * b_pad * D + 4 * b_pad
                         + 4 * P * P * (D * H1 + H1 * H2 + H2)
                         + 4 * P * (H1 + H2) + 4)

    out = pl.pallas_call(
        mlp_kernel,
        out_shape=jax.ShapeDtypeStruct((b_pad // P, P), jnp.float32),
        grid=(steps,),
        in_specs=[
            pl.BlockSpec((tb_p, P * D), lambda i: (i, 0)),        # x: streamed
            pl.BlockSpec((P * D, P * H1), lambda i: (0, 0)),      # W1: resident
            pl.BlockSpec((1, P * H1), lambda i: (0, 0)),          # b1
            pl.BlockSpec((P * H1, P * H2), lambda i: (0, 0)),     # W2
            pl.BlockSpec((1, P * H2), lambda i: (0, 0)),          # b2
            pl.BlockSpec((P * H2, P), lambda i: (0, 0)),          # W3
            pl.BlockSpec(memory_space=pltpu.MemorySpace.SMEM),    # b3 scalar
        ],
        out_specs=pl.BlockSpec((tb_p, P), lambda i: (i, 0)),
        compiler_params=pltpu.CompilerParams(
            dimension_semantics=("parallel",),
            vmem_limit_bytes=vmem_limit,
        ),
        cost_estimate=pl.CostEstimate(
            flops=flops, transcendentals=0, bytes_accessed=bytes_accessed),
    )(x_packed, w1_bd, b1_t, w2_bd, b2_t, w3_bd, b3_vec)

    # (B_pad/P, P) row-major -> (B_pad,) matches original row order.
    return out.reshape(b_pad)[:B]


def init_params(key, dim):
    """Deterministic init mimicking torch.nn.Linear default U(-1/sqrt(fan_in), 1/sqrt(fan_in))."""
    sizes = [(dim, 80), (80, 10), (10, 1)]
    params = []
    keys = jax.random.split(key, 2 * len(sizes))
    for i, (fan_in, fan_out) in enumerate(sizes):
        bound = 1.0 / math.sqrt(fan_in)
        w = jax.random.uniform(keys[2 * i], (fan_in, fan_out),
                               minval=-bound, maxval=bound, dtype=jnp.float32)
        b = jax.random.uniform(keys[2 * i + 1], (1, fan_out),
                               minval=-bound, maxval=bound, dtype=jnp.float32)
        params += [w, b]
    return tuple(params)


if __name__ == "__main__":
    key = jax.random.PRNGKey(0)
    k_x, k_p, k_x2 = jax.random.split(key, 3)

    D = 32
    params = init_params(k_p, D)
    w1, b1, w2, b2, w3, b3 = params

    def ref_forward(xx, w1_mat=w1):
        h = jnp.maximum(xx @ w1_mat + b1, 0.0)
        h = jnp.maximum(h @ w2 + b2, 0.0)
        return jnp.squeeze(h @ w3 + b3, axis=1)

    # Case 1: tiny batch (B=8) -> exercises zero-padding + single grid step.
    x_small = jax.random.normal(k_x, (8, D), dtype=jnp.float32)
    y_small = mlp_forward(x_small, params)
    jax.block_until_ready(y_small)
    assert y_small.shape == (8,)
    assert jnp.allclose(y_small, ref_forward(x_small), atol=1e-4, rtol=1e-4)

    # Case 2: multi-step pipelined grid (2048 rows, 512-row tiles -> 4 "parallel"
    # steps, lane-packed block-diagonal weights), f32 stream.
    x_big = jax.random.normal(k_x2, (2048, D), dtype=jnp.float32)
    y_big = mlp_forward(x_big, params, tb=512)
    jax.block_until_ready(y_big)
    assert y_big.shape == (2048,)
    assert jnp.allclose(y_big, ref_forward(x_big), atol=1e-4, rtol=1e-4)

    # Case 3: bf16 x / W1 stream with f32 accumulation; compare against the
    # reference evaluated on bf16-rounded x / W1.
    y_bf16 = mlp_forward(x_big, params, tb=512, x_dtype=jnp.bfloat16)
    jax.block_until_ready(y_bf16)
    x_r = x_big.astype(jnp.bfloat16).astype(jnp.float32)
    w1_r = w1.astype(jnp.bfloat16).astype(jnp.float32)
    assert jnp.allclose(y_bf16, ref_forward(x_r, w1_r), atol=1e-3, rtol=1e-3)

    print("KERNEL_OK")
</pallas_src>

<mosaic_0001>
module attributes {stable_mosaic.version = 11 : i64} {
  func.func @mlp_kernel(%arg0: i32, %arg1: memref<8x128xf32, #tpu.memory_space<vmem>>, %arg2: memref<128x320xf32, #tpu.memory_space<vmem>>, %arg3: memref<1x320xf32, #tpu.memory_space<vmem>>, %arg4: memref<320x40xf32, #tpu.memory_space<vmem>>, %arg5: memref<1x40xf32, #tpu.memory_space<vmem>>, %arg6: memref<40x4xf32, #tpu.memory_space<vmem>>, %arg7: memref<1xf32, #tpu.memory_space<smem>>, %arg8: memref<8x4xf32, #tpu.memory_space<vmem>>) attributes {dimension_semantics = [#tpu.dimension_semantics<parallel>], iteration_bounds = array<i64: 1>, scalar_prefetch = 0 : i64, scratch_operands = 0 : i64, tpu.core_type = #tpu.core_type<tc>, window_params = [{transform_indices = @transform_0, window_bounds = array<i64: 8, 128>}, {pipeline_mode = #tpu.pipeline_mode<synchronous>, transform_indices = @transform_1, window_bounds = array<i64: 128, 320>}, {pipeline_mode = #tpu.pipeline_mode<synchronous>, transform_indices = @transform_2, window_bounds = array<i64: 1, 320>}, {pipeline_mode = #tpu.pipeline_mode<synchronous>, transform_indices = @transform_3, window_bounds = array<i64: 320, 40>}, {pipeline_mode = #tpu.pipeline_mode<synchronous>, transform_indices = @transform_4, window_bounds = array<i64: 1, 40>}, {pipeline_mode = #tpu.pipeline_mode<synchronous>, transform_indices = @transform_5, window_bounds = array<i64: 40, 4>}, {transform_indices = @transform_6, window_bounds = array<i64: 1>}, {transform_indices = @transform_7, window_bounds = array<i64: 8, 4>}]} {
    %c0 = arith.constant 0 : index
    %c0_0 = arith.constant 0 : index
    %0 = vector.load %arg1[%c0, %c0_0] : memref<8x128xf32, #tpu.memory_space<vmem>>, vector<8x128xf32>
    %c0_1 = arith.constant 0 : index
    %c0_2 = arith.constant 0 : index
    %1 = vector.load %arg2[%c0_1, %c0_2] : memref<128x320xf32, #tpu.memory_space<vmem>>, vector<128x320xf32>
    %cst = arith.constant dense<0.000000e+00> : vector<8x320xf32>
    %2 = tpu.matmul %0, %1, %cst {dimension_numbers = #tpu.dot_dimension_numbers<[1], [0], [0], [1], [0, 0, 1, 1], [], []>} : vector<8x128xf32>, vector<128x320xf32>, vector<8x320xf32> -> vector<8x320xf32>
    %c0_3 = arith.constant 0 : index
    %c0_4 = arith.constant 0 : index
    %3 = vector.load %arg3[%c0_3, %c0_4] : memref<1x320xf32, #tpu.memory_space<vmem>>, vector<1x320xf32>
    %4 = vector.broadcast %3 : vector<1x320xf32> to vector<8x320xf32>
    %5 = arith.addf %2, %4 : vector<8x320xf32>
    %cst_5 = arith.constant 0.000000e+00 : f32
    %6 = vector.broadcast %cst_5 : f32 to vector<8x320xf32>
    %7 = arith.maximumf %5, %6 : vector<8x320xf32>
    %c0_6 = arith.constant 0 : index
    %c0_7 = arith.constant 0 : index
    %8 = vector.load %arg4[%c0_6, %c0_7] : memref<320x40xf32, #tpu.memory_space<vmem>>, vector<320x40xf32>
    %cst_8 = arith.constant dense<0.000000e+00> : vector<8x40xf32>
    %9 = tpu.matmul %7, %8, %cst_8 {dimension_numbers = #tpu.dot_dimension_numbers<[1], [0], [0], [1], [0, 0, 1, 1], [], []>} : vector<8x320xf32>, vector<320x40xf32>, vector<8x40xf32> -> vector<8x40xf32>
    %c0_9 = arith.constant 0 : index
    %c0_10 = arith.constant 0 : index
    %10 = vector.load %arg5[%c0_9, %c0_10] : memref<1x40xf32, #tpu.memory_space<vmem>>, vector<1x40xf32>
    %11 = vector.broadcast %10 : vector<1x40xf32> to vector<8x40xf32>
    %12 = arith.addf %9, %11 : vector<8x40xf32>
    %cst_11 = arith.constant 0.000000e+00 : f32
    %13 = vector.broadcast %cst_11 : f32 to vector<8x40xf32>
    %14 = arith.maximumf %12, %13 : vector<8x40xf32>
    %c0_12 = arith.constant 0 : index
    %c0_13 = arith.constant 0 : index
    %15 = vector.load %arg6[%c0_12, %c0_13] : memref<40x4xf32, #tpu.memory_space<vmem>>, vector<40x4xf32>
    %cst_14 = arith.constant dense<0.000000e+00> : vector<8x4xf32>
    %16 = tpu.matmul %14, %15, %cst_14 {dimension_numbers = #tpu.dot_dimension_numbers<[1], [0], [0], [1], [0, 0, 1, 1], [], []>} : vector<8x40xf32>, vector<40x4xf32>, vector<8x4xf32> -> vector<8x4xf32>
    %c0_15 = arith.constant 0 : index
    %17 = memref.load %arg7[%c0_15] : memref<1xf32, #tpu.memory_space<smem>>
    %18 = vector.broadcast %17 : f32 to vector<8x4xf32>
    %19 = arith.addf %16, %18 : vector<8x4xf32>
    %c0_16 = arith.constant 0 : index
    %c0_17 = arith.constant 0 : index
    %20 = vector.load %arg8[%c0_16, %c0_17] : memref<8x4xf32, #tpu.memory_space<vmem>>, vector<8x4xf32>
    tpu.vector_store %arg8[%c0_16, %c0_17], %19 {strides = array<i32>} : memref<8x4xf32, #tpu.memory_space<vmem>>, vector<8x4xf32>,
    return
  }
  func.func @transform_0(%arg0: i32) -> (i32, i32) {
    %c0_i32 = arith.constant 0 : i32
    %c0_i32_0 = arith.constant 0 : i32
    return %arg0, %c0_i32 : i32, i32
  }
  func.func @transform_1(%arg0: i32) -> (i32, i32) {
    %c0_i32 = arith.constant 0 : i32
    %c0_i32_0 = arith.constant 0 : i32
    %c0_i32_1 = arith.constant 0 : i32
    return %c0_i32, %c0_i32_0 : i32, i32
  }
  func.func @transform_2(%arg0: i32) -> (i32, i32) {
    %c0_i32 = arith.constant 0 : i32
    %c0_i32_0 = arith.constant 0 : i32
    %c0_i32_1 = arith.constant 0 : i32
    return %c0_i32, %c0_i32_0 : i32, i32
  }
  func.func @transform_3(%arg0: i32) -> (i32, i32) {
    %c0_i32 = arith.constant 0 : i32
    %c0_i32_0 = arith.constant 0 : i32
    %c0_i32_1 = arith.constant 0 : i32
    return %c0_i32, %c0_i32_0 : i32, i32
  }
  func.func @transform_4(%arg0: i32) -> (i32, i32) {
    %c0_i32 = arith.constant 0 : i32
    %c0_i32_0 = arith.constant 0 : i32
    %c0_i32_1 = arith.constant 0 : i32
    return %c0_i32, %c0_i32_0 : i32, i32
  }
  func.func @transform_5(%arg0: i32) -> (i32, i32) {
    %c0_i32 = arith.constant 0 : i32
    %c0_i32_0 = arith.constant 0 : i32
    %c0_i32_1 = arith.constant 0 : i32
    return %c0_i32, %c0_i32_0 : i32, i32
  }
  func.func @transform_6(%arg0: i32) -> i32 {
    %c0_i32 = arith.constant 0 : i32
    %c0_i32_0 = arith.constant 0 : i32
    return %c0_i32 : i32
  }
  func.func @transform_7(%arg0: i32) -> (i32, i32) {
    %c0_i32 = arith.constant 0 : i32
    %c0_i32_0 = arith.constant 0 : i32
    return %arg0, %c0_i32 : i32, i32
  }
}

</mosaic_0001>

<bundles_post_ra>
// kernel: tpu_custom_call.1
= control target key start
LH: loop header
LB: loop body
LE: loop exit
PB: predicated region body
PF: predicated region fallthrough
CT: control target
= control target key end

     0   :  { %v762_v3 = vmov 0.0|0.0   ;;  %v763_v4 = vmov 0.0   ;;  %vm764_vm0 = vmmov 0   ;;  %vm284_vm1 = vcmask 523264   ;;  %s1121_s1 = inlined_call_operand.vmem [shape: f32[128,320], index: 1, kind: input, shape index: {}]   ;;  %s1122_s3 = inlined_call_operand.vmem [shape: f32[320,40], index: 3, kind: input, shape index: {}]   ;;  %s1123_s0 = inlined_call_operand.vmem [shape: f32[8,128], index: 0, kind: input, shape index: {}]   ;;  %s1124_s2 = inlined_call_operand.vmem [shape: f32[1,320], index: 2, kind: input, shape index: {}]   ;;  %s1125_s5 = inlined_call_operand.vmem [shape: f32[40,4], index: 5, kind: input, shape index: {}]   ;;  %s1126_s4 = inlined_call_operand.vmem [shape: f32[1,40], index: 4, kind: input, shape index: {}]   ;;  %s1127_s6 = inlined_call_operand.<no memory space> [shape: f32[1], index: 6, kind: input, shape index: {}]   ;;  %s1128_s7 = inlined_call_operand.vmem [shape: f32[8,4], index: 7, kind: output, shape index: {}]  }
   0x1   :  { %v29_v0 = vld [vmem:[%s1121_s1 + $0x8] sm:$0xff]  ;;  %v32_v1 = vld [vmem:[%s1121_s1 + $0x20] sm:$0xff]  ;;  %685 = vmatprep.subr.bf16.mxu1 %v762_v3  ;;  %157 = vmatprep.mubr.f32.mxu0 %v763_v4  ;;  %v31_v6 = vld [vmem:[%s1121_s1 + $0x18] sm:$0xff]  ;;  %vm436_vm2 = vcmask 326656   ;;  %vm510_vm3 = vcmask 31744  }
   0x2   :  { %v28_v2 = vld [vmem:[%s1121_s1] sm:$0xff]  ;;  %v653_v5 = vpack.c.bf16 %v32_v1, %v29_v0  ;;  %v35_v7 = vld [vmem:[%s1121_s1 + $0x38] sm:$0xff]  ;;  %v38_v8 = vld [vmem:[%s1121_s1 + $0x50] sm:$0xff]  ;;  %618 = vmatprep.mubr.msk.f32.mxu1 %vm764_vm0, %v763_v4 }
   0x3   :  { %v655_v9 = vpack.c.bf16 %v31_v6, %v28_v2  ;;  %v657_v10 = vpack.c.bf16 %v38_v8, %v35_v7  ;;  %v34_v11 = vld [vmem:[%s1121_s1 + $0x30] sm:$0xff]  ;;  %v37_v12 = vld [vmem:[%s1121_s1 + $0x48] sm:$0xff]  ;;  %v44_v16 = vld [vmem:[%s1121_s1 + $0x80] sm:$0xff] }
   0x4   :  { %v30_v13 = vld [vmem:[%s1121_s1 + $0x10] sm:$0xff]  ;;  %654 = vmatprep.subr.bf16.mxu0 %v653_v5  ;;  %v33_v14 = vld [vmem:[%s1121_s1 + $0x28] sm:$0xff]  ;;  %v659_v17 = vpack.c.bf16 %v37_v12, %v34_v11  ;;  %v36_v19 = vld [vmem:[%s1121_s1 + $0x40] sm:$0xff] }
   0x5   :  { %v41_v15 = vld [vmem:[%s1121_s1 + $0x68] sm:$0xff]  ;;  %656 = vmatpush1.bf16.msra.mxu0 %v655_v9  ;;  %v686_v18 = vpack.c.bf16 %v33_v14, %v30_v13  ;;  %v40_v21 = vld [vmem:[%s1121_s1 + $0x60] sm:$0xff]  ;;  %v43_v22 = vld [vmem:[%s1121_s1 + $0x78] sm:$0xff] }
   0x6   :  { %658 = vmatprep.subr.bf16.mxu0 %v657_v10  ;;  %v661_v20 = vpack.c.bf16 %v44_v16, %v41_v15  ;;  %v39_v23 = vld [vmem:[%s1121_s1 + $0x58] sm:$0xff]  ;;  %v50_v26 = vld [vmem:[%s1121_s1 + $0xb0] sm:$0xff]  ;;  %v45_v28 = vld [vmem:[%s1121_s1 + $0x88] sm:$0xff]  ;;  %v663_v29 = vpack.c.bf16 %v43_v22, %v40_v21 }
   0x7   :  { %687 = vmatpush3.bf16.msra.mxu1 %v686_v18  ;;  %v689_v24 = vpack.c.bf16 %v39_v23, %v36_v19  ;;  %v47_v25 = vld [vmem:[%s1121_s1 + $0x98] sm:$0xff]  ;;  %v42_v27 = vld [vmem:[%s1121_s1 + $0x70] sm:$0xff]  ;;  %v49_v32 = vld [vmem:[%s1121_s1 + $0xa8] sm:$0xff] }
   0x8   :  { %688 = vmatprep.subr.bf16.mxu1 %v762_v3  ;;  %v665_v30 = vpack.c.bf16 %v50_v26, %v47_v25  ;;  %v46_v31 = vld [vmem:[%s1121_s1 + $0x90] sm:$0xff]  ;;  %v692_v33 = vpack.c.bf16 %v45_v28, %v42_v27  ;;  %v53_v34 = vld [vmem:[%s1121_s1 + $0xc8] sm:$0xff]  ;;  %v56_v35 = vld [vmem:[%s1121_s1 + $0xe0] sm:$0xff] }
   0x9   :  { %660 = vmatpush1.bf16.msra.mxu0 %v659_v17  ;;  %v48_v36 = vld [vmem:[%s1121_s1 + $0xa0] sm:$0xff]  ;;  %v51_v37 = vld [vmem:[%s1121_s1 + $0xb8] sm:$0xff]  ;;  %v667_v38 = vpack.c.bf16 %v49_v32, %v46_v31  ;;  %v669_v39 = vpack.c.bf16 %v56_v35, %v53_v34  ;;  %v62_v44 = vld [vmem:[%s1121_s1 + $0x110] sm:$0xff] }
   0xa   :  { %662 = vmatprep.subr.bf16.mxu0 %v661_v20  ;;  %v52_v40 = vld [vmem:[%s1121_s1 + $0xc0] sm:$0xff]  ;;  %v55_v41 = vld [vmem:[%s1121_s1 + $0xd8] sm:$0xff]  ;;  %v695_v42 = vpack.c.bf16 %v51_v37, %v48_v36  ;;  %v54_v45 = vld [vmem:[%s1121_s1 + $0xd0] sm:$0xff] }
   0xb   :  { %690 = vmatpush3.bf16.msra.mxu1 %v689_v24  ;;  %v59_v43 = vld [vmem:[%s1121_s1 + $0xf8] sm:$0xff]  ;;  %v57_v46 = vld [vmem:[%s1121_s1 + $0xe8] sm:$0xff]  ;;  %v671_v47 = vpack.c.bf16 %v55_v41, %v52_v40  ;;  %v58_v49 = vld [vmem:[%s1121_s1 + $0xf0] sm:$0xff] }
   0xc   :  { %691 = vmatprep.subr.bf16.mxu1 %v762_v3  ;;  %v673_v48 = vpack.c.bf16 %v62_v44, %v59_v43  ;;  %v61_v50 = vld [vmem:[%s1121_s1 + $0x108] sm:$0xff]  ;;  %v698_v51 = vpack.c.bf16 %v57_v46, %v54_v45  ;;  %v68_v53 = vld [vmem:[%s1121_s1 + $0x140] sm:$0xff]  ;;  %v63_v55 = vld [vmem:[%s1121_s1 + $0x118] sm:$0xff] }
   0xd   :  { %664 = vmatpush1.bf16.msra.mxu0 %v663_v29  ;;  %v65_v52 = vld [vmem:[%s1121_s1 + $0x128] sm:$0xff]  ;;  %v60_v54 = vld [vmem:[%s1121_s1 + $0x100] sm:$0xff]  ;;  %v675_v56 = vpack.c.bf16 %v61_v50, %v58_v49  ;;  %v67_v59 = vld [vmem:[%s1121_s1 + $0x138] sm:$0xff] }
   0xe   :  { %666 = vmatprep.subr.bf16.mxu0 %v665_v30  ;;  %v677_v57 = vpack.c.bf16 %v68_v53, %v65_v52  ;;  %v64_v58 = vld [vmem:[%s1121_s1 + $0x120] sm:$0xff]  ;;  %v701_v60 = vpack.c.bf16 %v63_v55, %v60_v54  ;;  %v71_v61 = vld [vmem:[%s1121_s1 + $0x158] sm:$0xff]  ;;  %v74_v62 = vld [vmem:[%s1121_s1 + $0x170] sm:$0xff] }
   0xf   :  { %693 = vmatpush3.bf16.msra.mxu1 %v692_v33  ;;  %v66_v63 = vld [vmem:[%s1121_s1 + $0x130] sm:$0xff]  ;;  %v69_v0 = vld [vmem:[%s1121_s1 + $0x148] sm:$0xff]  ;;  %v679_v1 = vpack.c.bf16 %v67_v59, %v64_v58  ;;  %v681_v2 = vpack.c.bf16 %v74_v62, %v71_v61  ;;  %v253_v8 = vld [vmem:[%s1122_s3 + $0x80] sm:$0xff] }
  0x10   :  { %694 = vmatprep.subr.bf16.mxu1 %v762_v3  ;;  %v70_v5 = vld [vmem:[%s1121_s1 + $0x150] sm:$0xff]  ;;  %v73_v6 = vld [vmem:[%s1121_s1 + $0x168] sm:$0xff]  ;;  %v704_v7 = vpack.c.bf16 %v69_v0, %v66_v63  ;;  %v72_v10 = vld [vmem:[%s1121_s1 + $0x160] sm:$0xff] }
  0x11   :  { %668 = vmatpush1.bf16.msra.mxu0 %v667_v38  ;;  %v254_v9 = vld [vmem:[%s1122_s3 + $0x88] sm:$0xff]  ;;  %v75_v11 = vld [vmem:[%s1121_s1 + $0x178] sm:$0xff]  ;;  %v683_v12 = vpack.c.bf16 %v73_v6, %v70_v5  ;;  %v237_v14 = vld [vmem:[%s1122_s3] sm:$0xff] }
  0x12   :  { %670 = vmatprep.subr.bf16.mxu0 %v669_v39  ;;  %v709_v13 = vpack.c.bf16 %v254_v9, %v253_v8  ;;  %v238_v15 = vld [vmem:[%s1122_s3 + $0x8] sm:$0xff]  ;;  %v707_v16 = vpack.c.bf16 %v75_v11, %v72_v10  ;;  %v255_v17 = vld [vmem:[%s1122_s3 + $0x90] sm:$0xff]  ;;  %v256_v18 = vld [vmem:[%s1122_s3 + $0x98] sm:$0xff]  ;;  %v78_v11 = vlaneseq }
  0x13   :  { %696 = vmatpush3.bf16.msra.mxu1 %v695_v42  ;;  %v269_v19 = vld [vmem:[%s1122_s3 + $0x100] sm:$0xff]  ;;  %v270_v20 = vld [vmem:[%s1122_s3 + $0x108] sm:$0xff]  ;;  %v711_v22 = vpack.c.bf16 %v238_v15, %v237_v14  ;;  %v713_v23 = vpack.c.bf16 %v256_v18, %v255_v17  ;;  %v239_v24 = vld [vmem:[%s1122_s3 + $0x10] sm:$0xff] }
  0x14   :  { %697 = vmatprep.subr.bf16.mxu1 %v762_v3  ;;  %v27_v21 = vld [vmem:[%s1123_s0] sm:$0xff]  ;;  %v240_v25 = vld [vmem:[%s1122_s3 + $0x18] sm:$0xff]  ;;  %v258_v27 = vld [vmem:[%s1122_s3 + $0xa8] sm:$0xff]  ;;  %v742_v28 = vpack.c.bf16 %v270_v20, %v269_v19 }
  0x15   :  { %672 = vmatpush1.bf16.msra.mxu0 %v671_v47  ;;  %v257_v26 = vld [vmem:[%s1122_s3 + $0xa0] sm:$0xff]  ;;  %v715_v29 = vpack.c.bf16 %v240_v25, %v239_v24  ;;  %v242_v32 = vld [vmem:[%s1122_s3 + $0x28] sm:$0xff]  ;;  %v259_v33 = vld [vmem:[%s1122_s3 + $0xb0] sm:$0xff] }
  0x16   :  { %674 = vmatprep.subr.bf16.mxu0 %v673_v48  ;;  %v717_v30 = vpack.c.bf16 %v258_v27, %v257_v26  ;;  %v241_v31 = vld [vmem:[%s1122_s3 + $0x20] sm:$0xff]  ;;  %v260_v34 = vld [vmem:[%s1122_s3 + $0xb8] sm:$0xff]  ;;  %v243_v37 = vld [vmem:[%s1122_s3 + $0x30] sm:$0xff] }
  0x17   :  { %699 = vmatpush3.bf16.msra.mxu1 %v698_v51  ;;  %v719_v35 = vpack.c.bf16 %v242_v32, %v241_v31  ;;  %v721_v36 = vpack.c.bf16 %v260_v34, %v259_v33  ;;  %v244_v38 = vld [vmem:[%s1122_s3 + $0x38] sm:$0xff]  ;;  %v261_v39 = vld [vmem:[%s1122_s3 + $0xc0] sm:$0xff]  ;;  %v262_v40 = vld [vmem:[%s1122_s3 + $0xc8] sm:$0xff] }
  0x18   :  { %700 = vmatprep.subr.bf16.mxu1 %v762_v3  ;;  %v723_v41 = vpack.c.bf16 %v244_v38, %v243_v37  ;;  %v725_v42 = vpack.c.bf16 %v262_v40, %v261_v39  ;;  %v245_v43 = vld [vmem:[%s1122_s3 + $0x40] sm:$0xff]  ;;  %v246_v44 = vld [vmem:[%s1122_s3 + $0x48] sm:$0xff]  ;;  %v263_v45 = vld [vmem:[%s1122_s3 + $0xd0] sm:$0xff] }
  0x19   :  { %676 = vmatpush1.bf16.msra.mxu0 %v675_v56  ;;  %v264_v46 = vld [vmem:[%s1122_s3 + $0xd8] sm:$0xff]  ;;  %v727_v47 = vpack.c.bf16 %v246_v44, %v245_v43  ;;  %v247_v49 = vld [vmem:[%s1122_s3 + $0x50] sm:$0xff]  ;;  %v265_v51 = vld [vmem:[%s1122_s3 + $0xe0] sm:$0xff] }
  0x1a   :  { %678 = vmatprep.subr.bf16.mxu0 %v677_v57  ;;  %v729_v48 = vpack.c.bf16 %v264_v46, %v263_v45  ;;  %v248_v50 = vld [vmem:[%s1122_s3 + $0x58] sm:$0xff]  ;;  %v266_v52 = vld [vmem:[%s1122_s3 + $0xe8] sm:$0xff]  ;;  %v249_v55 = vld [vmem:[%s1122_s3 + $0x60] sm:$0xff] }
  0x1b   :  { %702 = vmatpush3.bf16.msra.mxu1 %v701_v60  ;;  %v731_v53 = vpack.c.bf16 %v248_v50, %v247_v49  ;;  %v733_v54 = vpack.c.bf16 %v266_v52, %v265_v51  ;;  %v250_v56 = vld [vmem:[%s1122_s3 + $0x68] sm:$0xff]  ;;  %v271_v57 = vld [vmem:[%s1122_s3 + $0x110] sm:$0xff]  ;;  %v272_v59 = vld [vmem:[%s1122_s3 + $0x118] sm:$0xff] }
  0x1c   :  { %703 = vmatprep.subr.bf16.mxu1 %v762_v3  ;;  %v735_v58 = vpack.c.bf16 %v250_v56, %v249_v55  ;;  %v745_v60 = vpack.c.bf16 %v272_v59, %v271_v57  ;;  %v267_v61 = vld [vmem:[%s1122_s3 + $0xf0] sm:$0xff]  ;;  %v268_v62 = vld [vmem:[%s1122_s3 + $0xf8] sm:$0xff]  ;;  %v274_v6 = vld [vmem:[%s1122_s3 + $0x128] sm:$0xff] }
  0x1d   :  { %680 = vmatpush1.bf16.msra.mxu0 %v679_v1  ;;  %v737_v63 = vpack.c.bf16 %v268_v62, %v267_v61  ;;  %v251_v0 = vld [vmem:[%s1122_s3 + $0x70] sm:$0xff]  ;;  %v252_v1 = vld [vmem:[%s1122_s3 + $0x78] sm:$0xff]  ;;  %v76_v14 = vld [vmem:[%s1124_s2] sm:$0x7] }
  0x1e   :  { %682 = vmatprep.subr.bf16.mxu0 %v681_v2  ;;  %v273_v2 = vld [vmem:[%s1122_s3 + $0x120] sm:$0xff]  ;;  %v739_v5 = vpack.c.bf16 %v252_v1, %v251_v0  ;;  %v275_v8 = vld [vmem:[%s1122_s3 + $0x130] sm:$0xff]  ;;  %v276_v9 = vld [vmem:[%s1122_s3 + $0x138] sm:$0xff] }
  0x1f   :  { %705 = vmatpush3.bf16.msra.mxu1 %v704_v7  ;;  %v748_v7 = vpack.c.bf16 %v274_v6, %v273_v2  ;;  %v751_v10 = vpack.c.bf16 %v276_v9, %v275_v8  ;;  %v430_v31 = vld [vmem:[%s1125_s5 + $0x8] sm:$0xff]  ;;  %v431_v33 = vld [vmem:[%s1125_s5 + $0x10] sm:$0xff]  ;;  %v432_v34 = vld [vmem:[%s1125_s5 + $0x18] sm:$0xff] }
  0x20   :  { %706 = vmatprep.subr.bf16.mxu1 %v762_v3  ;;  %v516_v39 = vld [vmem:[%s1126_s4] ss:$0 sm:$0xff] }
  0x21   :  { %684 = vmatpush1.bf16.msra.mxu0 %v683_v12  ;;  %v79_v12 = vshrl.u32 %v78_v11, 7 }
  0x22   :  { %710 = vmatprep.subr.bf16.mxu0 %v709_v13 }
  0x23   :  { %708 = vmatpush3.bf16.msra.mxu1 %v707_v16  ;;  %v80_v13 = vsub.s32 0, %v79_v12  ;;  %v84_v15 = vsub.s32 1, %v79_v12  ;;  %v88_v16 = vsub.s32 2, %v79_v12 }
  0x24   :  { %158 = vmatmul.mubr.f32.vlgmr.msra.gmra.mrb[0].mxu0 %v27_v21  ;;  %741 = vmatprep.subr.bf16.mxu1 %v762_v3 }
  0x25   :  { %712 = vmatpush3.bf16.msra.mxu0 %v711_v22  ;;  %v81_v17 = vrot.slane %v76_v14, %v80_v13  ;;  %v85_v18 = vrot.slane %v76_v14, %v84_v15  ;;  %v89_v19 = vrot.slane %v76_v14, %v88_v16 }
  0x26   :  { %619 = vmatmul.mubr.f32.vlgmr.msra.gmra.mrb[0].mxu1 %v27_v21  ;;  %714 = vmatprep.subr.bf16.mxu0 %v713_v23 }
  0x27   :  { %743 = vmatpush3.bf16.msra.mxu1 %v742_v28  ;;  %637 = vmatprep.mubr.msk.f32.mxu1 %vm764_vm0, %v763_v4 }
  0x28   :  { %744 = vmatprep.subr.bf16.mxu1 %v762_v3 }
  0x29   :  { %716 = vmatpush3.bf16.msra.mxu0 %v715_v29 }
  0x2a   :  { %718 = vmatprep.subr.bf16.mxu0 %v717_v30  ;;  %v429_v30 = vld [vmem:[%s1125_s5] sm:$0xff] }
  0x2b   :  { %746 = vmatpush3.bf16.msra.mxu1 %v745_v60  ;;  %v754_v32 = vpack.c.bf16 %v430_v31, %v429_v30 }
  0x2c   :  { %747 = vmatprep.subr.bf16.mxu1 %v762_v3 }
  0x2d   :  { %720 = vmatpush3.bf16.msra.mxu0 %v719_v35  ;;  %v757_v35 = vpack.c.bf16 %v432_v34, %v431_v33 }
  0x2e   :  { %722 = vmatprep.subr.bf16.mxu0 %v721_v36  ;;  %v433_v36 = vld [vmem:[%s1125_s5 + $0x20] sm:$0xff] }
  0x2f   :  { %749 = vmatpush3.bf16.msra.mxu1 %v748_v7 }
  0x30   :  { %750 = vmatprep.subr.bf16.mxu1 %v762_v3 }
  0x31   :  { %724 = vmatpush3.bf16.msra.mxu0 %v723_v41 }
  0x32   :  { %726 = vmatprep.subr.bf16.mxu0 %v725_v42 }
  0x33   :  { %752 = vmatpush3.bf16.msra.mxu1 %v751_v10 }
  0x34   :  { %753 = vmatprep.subr.bf16.mxu1 %v762_v3 }
  0x35   :  { %728 = vmatpush3.bf16.msra.mxu0 %v727_v47 }
  0x36   :  { %730 = vmatprep.subr.bf16.mxu0 %v729_v48 }
  0x39   :  { %732 = vmatpush3.bf16.msra.mxu0 %v731_v53 }
  0x3a   :  { %734 = vmatprep.subr.bf16.mxu0 %v733_v54 }
  0x3d   :  { %736 = vmatpush3.bf16.msra.mxu0 %v735_v58 }
  0x3e   :  { %738 = vmatprep.subr.bf16.mxu0 %v737_v63 }
  0x41   :  { %740 = vmatpush3.bf16.msra.mxu0 %v739_v5 }
  0xf7   :  { %v159_v20 = vpop.f32.mrb[0].mxu0 }
  0xf8   :  { %v160_v21 = vadd.f32 %v159_v20, %v81_v17  ;;  %v161_v22 = vpop.f32.mrb[1].mxu0 }
  0xf9   :  { %v162_v23 = vadd.f32 %v161_v22, %v85_v18  ;;  %v230_v24 = vpop.f32.mrb[0].mxu1 }
  0xfa   :  { %v231_v25 = vadd.f32 %v230_v24, %v89_v19  ;;  %v620_v26 = vpop.f32.mrb[1].mxu1  ;;  %v234_v28 = vmax.f32 %v160_v21, 0.0 }
  0xfb   :  { %v235_v27 = vmax.f32 %v162_v23, 0.0 }
  0xfc   :  { %v236_v29 = vmax.f32 %v231_v25, 0.0 }
  0xfd   :  { %352 = vmatprep.mubr.f32.mxu0 %v235_v27 }
  0xfe   :  { %353 = vmatmul.mubr.f32.vlgmr.msra.gmra.mrb[2].mxu0 %v234_v28  ;;  %638 = vmatmul.mubr.msk.f32.vlgmr.msra.gmra.mrb[2].mxu1 %vm284_vm1, %v236_v29 }
  0xff   :  { %650 = vmatprep.mubr.msk.f32.mxu1 %vm764_vm0, %v763_v4  ;;  %755 = vmatpush3.bf16.msra.mxu1 %v754_v32 }
 0x100   :  { %756 = vmatprep.subr.bf16.mxu1 %v762_v3 }
 0x103   :  { %758 = vmatpush3.bf16.msra.mxu1 %v757_v35 }
 0x104   :  { %648 = vmatprep.subr.mxu1 %v763_v4  ;;  %v435_v4 = vstv %s1127_s6 }
 0x107   :  { %649 = vmatpush3.msra.mxu1 %v433_v36 }
 0x1d1   :  { %v568_v37 = vpop.f32.mrb[2].mxu0  ;;  %v424_v38 = vpop.f32.mrb[2].mxu1 }
 0x1d2   :  { %v569_v3 = vpop.f32.mrb[3].mxu0  ;;  %v639_v40 = vpop.f32.mrb[3].mxu1 }
 0x1d3   :  { %v570_v41 = vadd.f32 %v569_v3, %v568_v37 }
 0x1d5   :  { %v355_v42 = vadd.f32 %v570_v41, %v516_v39 }
 0x1d7   :  { %v425_v43 = vadd.f32 %v424_v38, %v355_v42 }
 0x1d9   :  { %v428_v44 = vmax.f32 %v425_v43, 0.0 }
 0x1db   :  { %651 = vmatmul.mubr.msk.f32.vlgmr.msra.gmra.mrb[4].mxu1 %vm436_vm2, %v428_v44 }
 0x2ae   :  { %v506_v45 = vpop.f32.mrb[4].mxu1 }
 0x2af   :  { %v507_v46 = vadd.f32 %v506_v45, %v435_v4  ;;  %v652_v47 = vpop.f32.mrb[5].mxu1 }
 0x2b1   :  { %511 = vst.msk [vmem:[%s1128_s7] sm:$0xff] %vm510_vm3, %v507_v46 }

</bundles_post_ra>
